<compile_context>
chip_gen: v7x
topology: tpu7x:2x2x1
jax: 0.10.0
libtpu: 0.0.40
codegen_flags: <defaults>
</compile_context>

<pallas_src>
import functools

import jax
import jax.numpy as jnp
from jax.experimental import pallas as pl
from jax.experimental.pallas import tpu as pltpu

_MiB = 1024 * 1024


def _round_up(x, m):
    return ((x + m - 1) // m) * m


def _vmem_capacity_bytes():
    """Per-TensorCore VMEM capacity; conservative 64 MiB fallback (v7x)."""
    try:
        cap = getattr(pltpu.get_tpu_info(), "vmem_capacity_bytes", None)
        if cap:
            return int(cap)
    except Exception:
        pass
    return 64 * _MiB


def _const_spec(shape):
    """Resident block: constant index map, single-buffered (never re-DMA'd)."""
    idx = lambda i: (0,) * len(shape)
    try:
        return pl.BlockSpec(shape, idx, pipeline_mode=pl.Buffered(1))
    except (TypeError, AttributeError):
        return pl.BlockSpec(shape, idx)


def region_feature_embedding_kernel(x_ref, w1_ref, w2_ref, pb_ref, o_ref,
                                    *, h_true, h_pad):
    # x_ref: (TM, M) bf16; w1_ref: (M, Hp) bf16; w2_ref: (Hp, Hp) bf16
    # pb_ref: (8, Hp) f32 -- rows: 0=b1, 1=b2, 2=gamma, 3=beta
    # o_ref: (TM, Hp) f32
    x = x_ref[...]

    # MLP: Linear(M->H) -> ReLU -> Linear(H->H) on the MXU in bf16,
    # f32 accumulation and f32 epilogue (conv affine pre-folded into w1/b1).
    h = jnp.dot(x, w1_ref[...], preferred_element_type=jnp.float32) + pb_ref[0:1, :]
    h = jnp.maximum(h, 0.0)
    z = (jnp.dot(h.astype(jnp.bfloat16), w2_ref[...],
                 preferred_element_type=jnp.float32) + pb_ref[1:2, :])

    # LayerNorm over the true hidden dim (eps = 1e-5); padded lanes masked out.
    inv_h = 1.0 / h_true
    if h_pad != h_true:
        mask = (jax.lax.broadcasted_iota(jnp.int32, (1, h_pad), 1)
                < h_true).astype(jnp.float32)
        z = z * mask
        mu = jnp.sum(z, axis=-1, keepdims=True) * inv_h
        zc = (z - mu) * mask
    else:
        mu = jnp.sum(z, axis=-1, keepdims=True) * inv_h
        zc = z - mu
    var = jnp.sum(zc * zc, axis=-1, keepdims=True) * inv_h
    o_ref[...] = zc * jax.lax.rsqrt(var + 1e-5) * pb_ref[2:3, :] + pb_ref[3:4, :]


@functools.partial(jax.jit, static_argnames=("use_conv",))
def region_feature_embedding(x, params, use_conv=True):
    """x: (B, M, M) float32 -> (B, M, H) float32."""
    B, M, M2 = x.shape
    assert M == M2, "input must be (B, num_regions, num_regions)"
    H = params["w1"].shape[1]
    Hp = _round_up(H, 128)  # lane-dense hidden dim

    # ---- Fold the 1x1-conv-mean residual affine into the first Linear ----
    w1 = params["w1"]
    b1 = params["b1"]
    if use_conv:
        w_mean = jnp.mean(params["conv_w"])
        b_mean = jnp.mean(params["conv_b"])
        w1 = w1 * (1.0 + w_mean)
        b1 = b1 + b_mean * jnp.sum(params["w1"], axis=0, keepdims=True)

    # ---- Pad hidden dim to 128-multiple, pack small vectors, cast to bf16 ----
    pad_h = Hp - H
    w1p = jnp.pad(w1, ((0, 0), (0, pad_h))).astype(jnp.bfloat16)
    w2p = jnp.pad(params["w2"], ((0, pad_h), (0, pad_h))).astype(jnp.bfloat16)
    pb = jnp.zeros((8, Hp), jnp.float32)
    pb = pb.at[0, :H].set(b1[0])
    pb = pb.at[1, :H].set(params["b2"][0])
    pb = pb.at[2, :H].set(params["gamma"][0])
    pb = pb.at[3, :H].set(params["beta"][0])

    rows = B * M

    # ---- VMEM-aware row-tile sizing ----
    vmem_cap = _vmem_capacity_bytes()
    HEADROOM = 4 * _MiB
    # Resident weights are single-buffered (Buffered(1)).
    weight_bytes = M * Hp * 2 + Hp * Hp * 2 + 8 * Hp * 4
    blocks_budget = max(vmem_cap - weight_bytes - HEADROOM, 2 * _MiB)
    bytes_per_row = 2 * (M * 2 + Hp * 4)  # double-buffered bf16 input + f32 output
    ALIGN = 256
    if rows <= ALIGN:
        TM = _round_up(rows, 8)
    else:
        tm_fit = max(ALIGN, (blocks_budget // bytes_per_row) // ALIGN * ALIGN)
        tm_split = _round_up((rows + 1) // 2, ALIGN)  # keep >=2 grid steps (megacore)
        TM = min(tm_fit, tm_split)
    rows_p = _round_up(rows, TM)
    n_tiles = rows_p // TM
    # TODO(synk): if bf16 weights alone exceed the VMEM budget (very large M/H,
    # esp. on v7x's 64 MiB), add a second grid axis tiling w2 output columns
    # instead of shrinking TM.

    x2d = x.reshape(rows, M).astype(jnp.bfloat16)
    if rows_p != rows:
        x2d = jnp.pad(x2d, ((0, rows_p - rows), (0, 0)))

    # Exact VMEM accounting: streamed blocks (2x buffered) + resident weights.
    block_bytes = 2 * (TM * M * 2 + TM * Hp * 4)
    vmem_limit = max(32 * _MiB, weight_bytes + block_bytes + HEADROOM)
    vmem_limit = min(vmem_limit, vmem_cap - HEADROOM)

    kernel = functools.partial(region_feature_embedding_kernel,
                               h_true=H, h_pad=Hp)
    out2d = pl.pallas_call(
        kernel,
        out_shape=jax.ShapeDtypeStruct((rows_p, Hp), jnp.float32),
        grid=(n_tiles,),
        in_specs=[
            pl.BlockSpec((TM, M), lambda i: (i, 0)),  # x tile, streamed
            _const_spec((M, Hp)),                     # w1 (conv-folded), resident
            _const_spec((Hp, Hp)),                    # w2, resident
            _const_spec((8, Hp)),                     # packed b1/b2/gamma/beta
        ],
        out_specs=pl.BlockSpec((TM, Hp), lambda i: (i, 0)),
        compiler_params=pltpu.CompilerParams(
            dimension_semantics=("parallel",),
            vmem_limit_bytes=int(vmem_limit),
        ),
    )(x2d, w1p, w2p, pb)

    out2d = out2d[:rows, :H]
    return out2d.reshape(B, M, H)


def init_params(num_regions, hidden_dim, key):
    """Deterministic synthetic parameters with the shapes __init__ implies."""
    k = jax.random.split(key, 6)
    M, H = num_regions, hidden_dim
    return {
        # Conv2d(1, H, kernel_size=1): weight (H,1,1,1) -> stored flat (1, H)
        "conv_w": jax.random.normal(k[0], (1, H), jnp.float32) * 0.1,
        "conv_b": jax.random.normal(k[1], (1, H), jnp.float32) * 0.1,
        # Linear(M, H): PyTorch weight is (H, M); stored transposed (M, H)
        "w1": jax.random.normal(k[2], (M, H), jnp.float32) * 0.1,
        "b1": jax.random.normal(k[3], (1, H), jnp.float32) * 0.1,
        # Linear(H, H): PyTorch weight (H, H); stored transposed (H, H)
        "w2": jax.random.normal(k[4], (H, H), jnp.float32) * 0.1,
        "b2": jax.random.normal(k[5], (1, H), jnp.float32) * 0.1,
        # LayerNorm(H) affine
        "gamma": jnp.ones((1, H), jnp.float32),
        "beta": jnp.zeros((1, H), jnp.float32),
    }


def _reference(x, p, use_conv=True):
    """Pure-JAX f32 reference mirroring the PyTorch forward."""
    if use_conv:
        x = x * (1.0 + jnp.mean(p["conv_w"])) + jnp.mean(p["conv_b"])
    h = jnp.maximum(x @ p["w1"] + p["b1"][0], 0.0)
    z = h @ p["w2"] + p["b2"][0]
    mu = jnp.mean(z, axis=-1, keepdims=True)
    var = jnp.mean((z - mu) ** 2, axis=-1, keepdims=True)
    return (z - mu) / jnp.sqrt(var + 1e-5) * p["gamma"][0] + p["beta"][0]


if __name__ == "__main__":
    B, M, H = 2, 8, 32  # batch, num_regions, hidden_dim

    key = jax.random.PRNGKey(0)
    kx, kp = jax.random.split(key)
    x = jax.random.normal(kx, (B, M, M), jnp.float32)
    params = init_params(M, H, kp)

    out = jax.block_until_ready(region_feature_embedding(x, params, use_conv=True))
    ref = _reference(x, params, use_conv=True)
    assert out.shape == (B, M, H)
    err = float(jnp.max(jnp.abs(out - ref)))
    assert err < 5e-2, err  # bf16 matmuls -> loosened tolerance

    # Also exercise the no-conv path.
    out_nc = jax.block_until_ready(
        region_feature_embedding(x, params, use_conv=False))
    ref_nc = _reference(x, params, use_conv=False)
    assert float(jnp.max(jnp.abs(out_nc - ref_nc))) < 5e-2

    print("KERNEL_OK")
</pallas_src>

<mosaic_0001>
module attributes {stable_mosaic.version = 11 : i64} {
  func.func @region_feature_embedding_kernel(%arg0: i32, %arg1: memref<16x8xbf16, #tpu.memory_space<vmem>>, %arg2: memref<8x128xbf16, #tpu.memory_space<vmem>>, %arg3: memref<128x128xbf16, #tpu.memory_space<vmem>>, %arg4: memref<8x128xf32, #tpu.memory_space<vmem>>, %arg5: memref<16x128xf32, #tpu.memory_space<vmem>>) attributes {dimension_semantics = [#tpu.dimension_semantics<parallel>], iteration_bounds = array<i64: 1>, scalar_prefetch = 0 : i64, scratch_operands = 0 : i64, tpu.core_type = #tpu.core_type<tc>, window_params = [{transform_indices = @transform_0, window_bounds = array<i64: 16, 8>}, {pipeline_mode = #tpu.pipeline_mode<synchronous>, transform_indices = @transform_1, window_bounds = array<i64: 8, 128>}, {pipeline_mode = #tpu.pipeline_mode<synchronous>, transform_indices = @transform_2, window_bounds = array<i64: 128, 128>}, {pipeline_mode = #tpu.pipeline_mode<synchronous>, transform_indices = @transform_3, window_bounds = array<i64: 8, 128>}, {transform_indices = @transform_4, window_bounds = array<i64: 16, 128>}]} {
    %c0 = arith.constant 0 : index
    %c0_0 = arith.constant 0 : index
    %0 = vector.load %arg1[%c0, %c0_0] : memref<16x8xbf16, #tpu.memory_space<vmem>>, vector<16x8xbf16>
    %c0_1 = arith.constant 0 : index
    %c0_2 = arith.constant 0 : index
    %1 = vector.load %arg2[%c0_1, %c0_2] : memref<8x128xbf16, #tpu.memory_space<vmem>>, vector<8x128xbf16>
    %cst = arith.constant dense<0.000000e+00> : vector<16x128xf32>
    %2 = tpu.matmul %0, %1, %cst {dimension_numbers = #tpu.dot_dimension_numbers<[1], [0], [0], [1], [0, 0, 1, 1], [], []>} : vector<16x8xbf16>, vector<8x128xbf16>, vector<16x128xf32> -> vector<16x128xf32>
    %c0_3 = arith.constant 0 : index
    %c0_4 = arith.constant 0 : index
    %3 = vector.load %arg4[%c0_3, %c0_4] : memref<8x128xf32, #tpu.memory_space<vmem>>, vector<1x128xf32>
    %4 = vector.broadcast %3 : vector<1x128xf32> to vector<16x128xf32>
    %5 = arith.addf %2, %4 : vector<16x128xf32>
    %cst_5 = arith.constant 0.000000e+00 : f32
    %6 = vector.broadcast %cst_5 : f32 to vector<16x128xf32>
    %7 = arith.maximumf %5, %6 : vector<16x128xf32>
    %8 = arith.truncf %7 : vector<16x128xf32> to vector<16x128xbf16>
    %c0_6 = arith.constant 0 : index
    %c0_7 = arith.constant 0 : index
    %9 = vector.load %arg3[%c0_6, %c0_7] : memref<128x128xbf16, #tpu.memory_space<vmem>>, vector<128x128xbf16>
    %cst_8 = arith.constant dense<0.000000e+00> : vector<16x128xf32>
    %10 = tpu.matmul %8, %9, %cst_8 {dimension_numbers = #tpu.dot_dimension_numbers<[1], [0], [0], [1], [0, 0, 1, 1], [], []>} : vector<16x128xbf16>, vector<128x128xbf16>, vector<16x128xf32> -> vector<16x128xf32>
    %c1 = arith.constant 1 : index
    %c0_9 = arith.constant 0 : index
    %11 = vector.load %arg4[%c1, %c0_9] : memref<8x128xf32, #tpu.memory_space<vmem>>, vector<1x128xf32>
    %12 = vector.broadcast %11 : vector<1x128xf32> to vector<16x128xf32>
    %13 = arith.addf %10, %12 : vector<16x128xf32>
    %14 = tpu.iota {dimensions = array<i32: 1>} : vector<1x128xi32>
    %c32_i32 = arith.constant 32 : i32
    %15 = vector.broadcast %c32_i32 : i32 to vector<1x128xi32>
    %16 = arith.cmpi slt, %14, %15 : vector<1x128xi32>
    %17 = arith.extui %16 : vector<1x128xi1> to vector<1x128xi32>
    %18 = arith.sitofp %17 : vector<1x128xi32> to vector<1x128xf32>
    %19 = vector.broadcast %18 : vector<1x128xf32> to vector<16x128xf32>
    %20 = arith.mulf %13, %19 : vector<16x128xf32>
    %cst_10 = arith.constant dense<0.000000e+00> : vector<16xf32>
    %21 = vector.multi_reduction <add>, %20, %cst_10 [1] : vector<16x128xf32> to vector<16xf32>
    %22 = vector.shape_cast %21 : vector<16xf32> to vector<16x1xf32>
    %cst_11 = arith.constant 3.125000e-02 : f32
    %23 = vector.broadcast %cst_11 : f32 to vector<16x1xf32>
    %24 = arith.mulf %22, %23 : vector<16x1xf32>
    %25 = vector.broadcast %24 : vector<16x1xf32> to vector<16x128xf32>
    %26 = arith.subf %20, %25 : vector<16x128xf32>
    %27 = vector.broadcast %18 : vector<1x128xf32> to vector<16x128xf32>
    %28 = arith.mulf %26, %27 : vector<16x128xf32>
    %29 = arith.mulf %28, %28 : vector<16x128xf32>
    %cst_12 = arith.constant dense<0.000000e+00> : vector<16xf32>
    %30 = vector.multi_reduction <add>, %29, %cst_12 [1] : vector<16x128xf32> to vector<16xf32>
    %31 = vector.shape_cast %30 : vector<16xf32> to vector<16x1xf32>
    %cst_13 = arith.constant 3.125000e-02 : f32
    %32 = vector.broadcast %cst_13 : f32 to vector<16x1xf32>
    %33 = arith.mulf %31, %32 : vector<16x1xf32>
    %cst_14 = arith.constant 9.99999974E-6 : f32
    %34 = vector.broadcast %cst_14 : f32 to vector<16x1xf32>
    %35 = arith.addf %33, %34 : vector<16x1xf32>
    %36 = math.rsqrt %35 : vector<16x1xf32>
    %37 = vector.broadcast %36 : vector<16x1xf32> to vector<16x128xf32>
    %38 = arith.mulf %28, %37 : vector<16x128xf32>
    %c2 = arith.constant 2 : index
    %c0_15 = arith.constant 0 : index
    %39 = vector.load %arg4[%c2, %c0_15] : memref<8x128xf32, #tpu.memory_space<vmem>>, vector<1x128xf32>
    %40 = vector.broadcast %39 : vector<1x128xf32> to vector<16x128xf32>
    %41 = arith.mulf %38, %40 : vector<16x128xf32>
    %c3 = arith.constant 3 : index
    %c0_16 = arith.constant 0 : index
    %42 = vector.load %arg4[%c3, %c0_16] : memref<8x128xf32, #tpu.memory_space<vmem>>, vector<1x128xf32>
    %43 = vector.broadcast %42 : vector<1x128xf32> to vector<16x128xf32>
    %44 = arith.addf %41, %43 : vector<16x128xf32>
    %c0_17 = arith.constant 0 : index
    %c0_18 = arith.constant 0 : index
    %45 = vector.load %arg5[%c0_17, %c0_18] : memref<16x128xf32, #tpu.memory_space<vmem>>, vector<16x128xf32>
    tpu.vector_store %arg5[%c0_17, %c0_18], %44 {strides = array<i32>} : memref<16x128xf32, #tpu.memory_space<vmem>>, vector<16x128xf32>,
    return
  }
  func.func @transform_0(%arg0: i32) -> (i32, i32) {
    %c0_i32 = arith.constant 0 : i32
    %c0_i32_0 = arith.constant 0 : i32
    return %arg0, %c0_i32 : i32, i32
  }
  func.func @transform_1(%arg0: i32) -> (i32, i32) {
    %c0_i32 = arith.constant 0 : i32
    %c0_i32_0 = arith.constant 0 : i32
    %c0_i32_1 = arith.constant 0 : i32
    return %c0_i32, %c0_i32_0 : i32, i32
  }
  func.func @transform_2(%arg0: i32) -> (i32, i32) {
    %c0_i32 = arith.constant 0 : i32
    %c0_i32_0 = arith.constant 0 : i32
    %c0_i32_1 = arith.constant 0 : i32
    return %c0_i32, %c0_i32_0 : i32, i32
  }
  func.func @transform_3(%arg0: i32) -> (i32, i32) {
    %c0_i32 = arith.constant 0 : i32
    %c0_i32_0 = arith.constant 0 : i32
    %c0_i32_1 = arith.constant 0 : i32
    return %c0_i32, %c0_i32_0 : i32, i32
  }
  func.func @transform_4(%arg0: i32) -> (i32, i32) {
    %c0_i32 = arith.constant 0 : i32
    %c0_i32_0 = arith.constant 0 : i32
    return %arg0, %c0_i32 : i32, i32
  }
}

</mosaic_0001>

<bundles_post_ra>
// kernel: region_feature_embedding.1
= control target key start
LH: loop header
LB: loop body
LE: loop exit
PB: predicated region body
PF: predicated region fallthrough
CT: control target
= control target key end

     0   :  { %vm35_vm0 = vcmask 1043456   ;;  %v311_v0 = vmov 0.0   ;;  %vm312_vm1 = vmmov 0   ;;  %vm31_vm2 = vcmask 64512   ;;  %s386_s1 = inlined_call_operand.vmem [shape: bf16[8,128], index: 1, kind: input, shape index: {}]   ;;  %s387_s0 = inlined_call_operand.vmem [shape: bf16[16,8], index: 0, kind: input, shape index: {}]   ;;  %s388_s2 = inlined_call_operand.vmem [shape: bf16[128,128], index: 2, kind: input, shape index: {}]   ;;  %s389_s3 = inlined_call_operand.vmem [shape: f32[8,128], index: 3, kind: input, shape index: {}]   ;;  %s390_s4 = inlined_call_operand.vmem [shape: f32[16,128], index: 4, kind: output, shape index: {}]  }
   0x1   :  { %270 = vmatprep.subr.bf16.mxu0 %v311_v0  ;;  %v20_v1 = vld [vmem:[%s386_s1] sm:$0xf]  ;;  %272 = vmatprep.mubr.msk.bf16.mxu0 %vm312_vm1, %v311_v0  ;;  %v300_v5 = vld [vmem:[%s388_s2 + $0x8] sm:$0xff]   ;;  %v301_v6 = vld [vmem:[%s388_s2 + $0x10] sm:$0xff]   ;;  %v193_v22 = vlaneseq }
   0x2   :  { %v37_v2 = vsel %vm35_vm0, %v20_v1, 0  ;;  %v298_v3 = vld [vmem:[%s387_s0] sm:$0xff]   ;;  %276 = vmatprep.subr.bf16.mxu1 %v311_v0  ;;  %292 = vmatprep.mubr.msk.bf16.mxu1 %vm312_vm1, %v311_v0  ;;  %v302_v7 = vld [vmem:[%s388_s2 + $0x18] sm:$0xff]   ;;  %v304_v9 = vld [vmem:[%s388_s2 + $0x28] sm:$0xff]  }
   0x3   :  { %271 = vmatpush3.bf16.msra.mxu0 %v37_v2  ;;  %v299_v4 = vld [vmem:[%s388_s2] sm:$0xff]   ;;  %v305_v10 = vld [vmem:[%s388_s2 + $0x30] sm:$0xff]   ;;  %v306_v11 = vld [vmem:[%s388_s2 + $0x38] sm:$0xff]   ;;  %v194_v23 = vand.u32 127, %v193_v22 }
   0x4   :  { %277 = vmatpush3.bf16.msra.mxu1 %v299_v4  ;;  %v303_v8 = vld [vmem:[%s388_s2 + $0x20] sm:$0xff]  }
   0x5   :  { %278 = vmatprep.subr.bf16.mxu1 %v311_v0  ;;  %v244_v12 = vld [vmem:[%s389_s3] ss:$0 sm:$0xff]  ;;  %vm195_vm3 = vcmp.lt.s32.totalorder %v194_v23, 32  ;;  %v247_v24 = vld [vmem:[%s389_s3 + $0x1] ss:$0 sm:$0xff] }
   0x6   :  { %273 = vmatmul.mubr.msk.bf16.vlgmr.msra.gmra.mrb[0].mxu0 %vm31_vm2, %v298_v3  ;;  %v256_v26 = vsel %vm195_vm3, 1.0, %v311_v0  ;;  %v257_v51 = vld [vmem:[%s389_s3 + $0x2] ss:$0 sm:$0xff]  ;;  %v258_v53 = vld [vmem:[%s389_s3 + $0x3] ss:$0 sm:$0xff] }
   0x8   :  { %279 = vmatpush3.bf16.msra.mxu1 %v300_v5 }
   0x9   :  { %280 = vmatprep.subr.bf16.mxu1 %v311_v0 }
   0xc   :  { %281 = vmatpush3.bf16.msra.mxu1 %v301_v6 }
   0xd   :  { %282 = vmatprep.subr.bf16.mxu1 %v311_v0 }
  0x10   :  { %283 = vmatpush3.bf16.msra.mxu1 %v302_v7 }
  0x11   :  { %284 = vmatprep.subr.bf16.mxu1 %v311_v0 }
  0x14   :  { %285 = vmatpush3.bf16.msra.mxu1 %v303_v8 }
  0x15   :  { %286 = vmatprep.subr.bf16.mxu1 %v311_v0 }
  0x18   :  { %287 = vmatpush3.bf16.msra.mxu1 %v304_v9 }
  0x19   :  { %288 = vmatprep.subr.bf16.mxu1 %v311_v0 }
  0x1c   :  { %289 = vmatpush3.bf16.msra.mxu1 %v305_v10 }
  0x1d   :  { %290 = vmatprep.subr.bf16.mxu1 %v311_v0 }
  0x20   :  { %291 = vmatpush3.bf16.msra.mxu1 %v306_v11 }
  0xd9   :  { %v73_v13 = vpop.f32.mrb[0].mxu0 }
  0xda   :  { %v74_v14 = vadd.f32 %v244_v12, %v73_v13  ;;  %v274_v15 = vpop.f32.mrb[1].mxu0 }
  0xdb   :  { %v76_v16 = vpop.f32.mrb[2].mxu0 }
  0xdc   :  { %v77_v17 = vadd.f32 %v244_v12, %v76_v16  ;;  %v275_v18 = vpop.f32.mrb[3].mxu0  ;;  %v80_v19 = vmax.f32 %v74_v14, 0.0 }
  0xde   :  { %v81_v20 = vmax.f32 %v77_v17, 0.0 }
  0xe0   :  { %v82_v21 = vpack.c.bf16 %v81_v20, %v80_v19 }
  0xe2   :  { %293 = vmatmul.mubr.bf16.vlgmr.msra.gmra.mrb[0].mxu1 %v82_v21 }
 0x1b5   :  { %v186_v25 = vpop.f32.mrb[0].mxu1 }
 0x1b6   :  { %v187_v27 = vadd.f32 %v247_v24, %v186_v25  ;;  %v294_v28 = vpop.f32.mrb[1].mxu1 }
 0x1b7   :  { %v189_v29 = vpop.f32.mrb[2].mxu1 }
 0x1b8   :  { %v190_v30 = vadd.f32 %v247_v24, %v189_v29  ;;  %v295_v31 = vpop.f32.mrb[3].mxu1  ;;  %v198_v32 = vmul.f32 %v256_v26, %v187_v27 }
 0x1ba   :  { %200 = vadd.xlane.f32.xlu0 %v198_v32  ;;  %v199_v33 = vmul.f32 %v256_v26, %v190_v30 }
 0x1be   :  { %202 = vadd.xlane.f32.xlu0 %v199_v33 }
 0x247   :  { %v201_v34 = vpop.xlane.xlu0 %200 }
 0x248   :  { %v204_v35 = vmul.f32 0.03125, %v201_v34 }
 0x24a   :  { %v206_v36 = vsub.f32 %v198_v32, %v204_v35 }
 0x24b   :  { %v203_v37 = vpop.xlane.xlu0 %202 }
 0x24c   :  { %v205_v38 = vmul.f32 0.03125, %v203_v37  ;;  %v208_v39 = vmul.f32 %v256_v26, %v206_v36 }
 0x24e   :  { %v207_v40 = vsub.f32 %v199_v33, %v205_v38  ;;  %v210_v41 = vmul.f32 %v208_v39, %v208_v39 }
 0x250   :  { %212 = vadd.xlane.f32.xlu1 %v210_v41  ;;  %v209_v42 = vmul.f32 %v256_v26, %v207_v40 }
 0x252   :  { %v211_v43 = vmul.f32 %v209_v42, %v209_v42 }
 0x254   :  { %214 = vadd.xlane.f32.xlu1 %v211_v43 }
 0x2dd   :  { %v213_v44 = vpop.xlane.xlu1 %212 }
 0x2de   :  { %v216_v45 = vmul.f32 0.03125, %v213_v44 }
 0x2e0   :  { %v218_v46 = vadd.f32 1e-05, %v216_v45 }
 0x2e1   :  { %v215_v47 = vpop.xlane.xlu1 %214 }
 0x2e2   :  { %307 = vrsqrt.f32 %v218_v46  ;;  %v217_v48 = vmul.f32 0.03125, %v215_v47 }
 0x2e4   :  { %v219_v49 = vadd.f32 1e-05, %v217_v48 }
 0x2e6   :  { %309 = vrsqrt.f32 %v219_v49 }
 0x2ec   :  { %v308_v50 = vpop.eup %307 }
 0x2ed   :  { %v222_v52 = vmul.f32 %v308_v50, %v208_v39 }
 0x2ef   :  { %v229_v54 = vmul.f32 %v257_v51, %v222_v52 }
 0x2f0   :  { %v310_v55 = vpop.eup %309 }
 0x2f1   :  { %v236_v56 = vadd.f32 %v258_v53, %v229_v54  ;;  %v223_v57 = vmul.f32 %v310_v55, %v209_v42 }
 0x2f3   :  { %238 = vst [vmem:[%s390_s4] sm:$0xff] %v236_v56  ;;  %v230_v58 = vmul.f32 %v257_v51, %v223_v57 }
 0x2f5   :  { %v237_v59 = vadd.f32 %v258_v53, %v230_v58 }
 0x2f7   :  { %239 = vst [vmem:[%s390_s4 + $0x8] sm:$0xff] %v237_v59 }

</bundles_post_ra>
